<compile_context>
chip_gen: v7x
topology: tpu7x:2x2x1
jax: 0.10.0
libtpu: 0.0.40
codegen_flags: <defaults>
</compile_context>

<pallas_src>
import functools

import jax
import jax.numpy as jnp
from jax.experimental import pallas as pl
from jax.experimental.pallas import tpu as pltpu

# args.PenaltyBw is a CLI hyperparameter in the reference; fixed here deterministically.
PENALTY_BW = 1.0


def _bwloss_kernel(bw_ref, out_ref, *, d, upcast):
    """Per-row BwLoss on one (tm, D) tile; writes (tm, 1) per-row losses."""
    x = bw_ref[...]                                             # (tm, D), input dtype
    if upcast:
        x = x.astype(jnp.float32)

    # Row mean: one cross-lane reduce, f32 accumulation.
    row_sum = jnp.sum(x, axis=-1, keepdims=True, dtype=jnp.float32)   # (tm, 1)
    row_mean = row_sum * jnp.float32(1.0 / d)
    mean_cmp = row_mean.astype(x.dtype)                         # compare in compute dtype

    above = x > mean_cmp
    below = x < mean_cmp

    zero = jnp.zeros((), x.dtype)
    # Masked sums / counts: selects stay in the compute dtype, reductions
    # accumulate in f32.  Direct sum_below (no derived form) for accuracy.
    sum_above = jnp.sum(jnp.where(above, x, zero), axis=-1, keepdims=True,
                        dtype=jnp.float32)
    sum_below = jnp.sum(jnp.where(below, x, zero), axis=-1, keepdims=True,
                        dtype=jnp.float32)
    cnt_above = jnp.sum(above.astype(jnp.float32), axis=-1, keepdims=True)
    cnt_below = jnp.sum(below.astype(jnp.float32), axis=-1, keepdims=True)

    mean_above = sum_above * pl.reciprocal(cnt_above, approx=False)
    mean_below = sum_below * pl.reciprocal(cnt_below, approx=False)

    # Rows past N in a partial last tile are computed but discarded by the
    # partial-block writeback, so no validity mask is needed.
    out_ref[...] = 2.0 - (mean_above - mean_below)              # (tm, 1) f32


def _round_up(x, m):
    return ((x + m - 1) // m) * m


def bw_loss(bw, *, penalty=PENALTY_BW, tm=None, target_block_bytes=8 << 20,
            native_dtype_compute=None):
    """bw: [N, D] float array (f32 or bf16). Returns scalar PenaltyBw * mean_i(loss_i)."""
    n, d = bw.shape
    itemsize = jnp.dtype(bw.dtype).itemsize
    # Sublane packing multiple for the second-to-last block dim.
    sublane = {4: 8, 2: 16, 1: 32}.get(itemsize, 8)

    if native_dtype_compute is None:
        # Sub-32-bit inputs: compare/select natively (bf16 VALU on v6e/v7x).
        # Pass native_dtype_compute=False explicitly on v5e (no bf16 VPU).
        native_dtype_compute = itemsize < 4
    upcast = not native_dtype_compute

    def _vmem_budget(t):
        in_blk = t * d * itemsize
        tmp_blk = t * d * (4 if upcast else itemsize)
        # 2x double-buffered input + ~2 tile-sized temporaries + headroom.
        return 2 * in_blk + 2 * tmp_blk + (4 << 20)

    n_pad = _round_up(n, sublane)
    if tm is None:
        # Byte-budgeted row tile: ~target_block_bytes per input block.
        rows_fit = max(sublane, target_block_bytes // (d * itemsize))
        tm = (rows_fit // sublane) * sublane
        # Keep >=2 grid steps when N allows it (v7x megacore sharding).
        tm_two_tiles = _round_up(-(-n // 2), sublane)
        tm = min(tm, n_pad, max(tm_two_tiles, sublane))
        # Shrink until the working set fits under the v7x-safe 56 MiB cap.
        while _vmem_budget(tm) > (56 << 20) and tm > sublane:
            tm = max(sublane, ((tm // 2) // sublane) * sublane)
    assert tm % sublane == 0, "row tile must be a multiple of the sublane packing"

    grid = (pl.cdiv(n, tm),)

    vmem_limit = int(min(56 << 20, max(32 << 20, _vmem_budget(tm))))

    kernel = functools.partial(_bwloss_kernel, d=d, upcast=upcast)

    per_row = pl.pallas_call(
        kernel,
        out_shape=jax.ShapeDtypeStruct((n, 1), jnp.float32),
        grid_spec=pltpu.PrefetchScalarGridSpec(
            num_scalar_prefetch=0,
            grid=grid,
            in_specs=[pl.BlockSpec((tm, d), lambda i: (i, 0))],
            out_specs=pl.BlockSpec((tm, 1), lambda i: (i, 0)),
        ),
        compiler_params=pltpu.CompilerParams(
            dimension_semantics=("parallel",),   # no carried state -> megacore-shardable
            vmem_limit_bytes=vmem_limit,
        ),
    )(bw)

    # Final penalty * sum / N in the wrapper (better f32 accumulation for large N).
    return penalty * jnp.sum(per_row) / jnp.float32(n)


def _bw_loss_ref(bw, penalty=PENALTY_BW):
    """Pure-JAX reference mirroring the PyTorch loop."""
    x = bw.astype(jnp.float32)
    m = jnp.mean(x, axis=-1, keepdims=True)
    above = x > m
    below = x < m
    mean_above = jnp.sum(jnp.where(above, x, 0.0), -1) / jnp.sum(above, -1)
    mean_below = jnp.sum(jnp.where(below, x, 0.0), -1) / jnp.sum(below, -1)
    loss = jnp.sum(2.0 - (mean_above - mean_below))
    return penalty * loss / x.shape[0]


if __name__ == "__main__":
    key = jax.random.PRNGKey(0)
    k1, k2 = jax.random.split(key)

    # Small demo shapes; D lane-aligned to 128.
    N, D = 16, 256
    bw = jax.random.normal(k1, (N, D), dtype=jnp.float32)
    out = jax.block_until_ready(bw_loss(bw))
    ref = _bw_loss_ref(bw)
    assert jnp.allclose(out, ref, rtol=1e-5, atol=1e-5), (out, ref)

    # Exercise the non-divisible-N path (partial last input/output block).
    N2, D2 = 24, 128
    bw2 = jax.random.normal(k2, (N2, D2), dtype=jnp.float32)
    out2 = jax.block_until_ready(bw_loss(bw2, tm=16))
    ref2 = _bw_loss_ref(bw2)
    assert jnp.allclose(out2, ref2, rtol=1e-5, atol=1e-5), (out2, ref2)

    print("KERNEL_OK")
</pallas_src>

<mosaic_0001>
module attributes {stable_mosaic.version = 11 : i64} {
  func.func @_bwloss_kernel(%arg0: i32, %arg1: memref<8x256xf32, #tpu.memory_space<vmem>>, %arg2: memref<8x1xf32, #tpu.memory_space<vmem>>) attributes {dimension_semantics = [#tpu.dimension_semantics<parallel>], iteration_bounds = array<i64: 2>, scalar_prefetch = 0 : i64, scratch_operands = 0 : i64, tpu.core_type = #tpu.core_type<tc>, window_params = [{transform_indices = @transform_0, window_bounds = array<i64: 8, 256>}, {transform_indices = @transform_1, window_bounds = array<i64: 8, 1>}]} {
    %c0 = arith.constant 0 : index
    %c0_0 = arith.constant 0 : index
    %0 = vector.load %arg1[%c0, %c0_0] : memref<8x256xf32, #tpu.memory_space<vmem>>, vector<8x256xf32>
    %cst = arith.constant dense<0.000000e+00> : vector<8xf32>
    %1 = vector.multi_reduction <add>, %0, %cst [1] : vector<8x256xf32> to vector<8xf32>
    %2 = vector.shape_cast %1 : vector<8xf32> to vector<8x1xf32>
    %cst_1 = arith.constant 3.906250e-03 : f32
    %3 = vector.broadcast %cst_1 : f32 to vector<8x1xf32>
    %4 = arith.mulf %2, %3 : vector<8x1xf32>
    %5 = vector.broadcast %4 : vector<8x1xf32> to vector<8x256xf32>
    %6 = arith.cmpf ogt, %0, %5 : vector<8x256xf32>
    %7 = vector.broadcast %4 : vector<8x1xf32> to vector<8x256xf32>
    %8 = arith.cmpf olt, %0, %7 : vector<8x256xf32>
    %cst_2 = arith.constant 0.000000e+00 : f32
    %9 = vector.broadcast %cst_2 : f32 to vector<8x256xf32>
    %10 = arith.select %6, %0, %9 : vector<8x256xi1>, vector<8x256xf32>
    %cst_3 = arith.constant dense<0.000000e+00> : vector<8xf32>
    %11 = vector.multi_reduction <add>, %10, %cst_3 [1] : vector<8x256xf32> to vector<8xf32>
    %12 = vector.shape_cast %11 : vector<8xf32> to vector<8x1xf32>
    %cst_4 = arith.constant 0.000000e+00 : f32
    %13 = vector.broadcast %cst_4 : f32 to vector<8x256xf32>
    %14 = arith.select %8, %0, %13 : vector<8x256xi1>, vector<8x256xf32>
    %cst_5 = arith.constant dense<0.000000e+00> : vector<8xf32>
    %15 = vector.multi_reduction <add>, %14, %cst_5 [1] : vector<8x256xf32> to vector<8xf32>
    %16 = vector.shape_cast %15 : vector<8xf32> to vector<8x1xf32>
    %17 = arith.extui %6 : vector<8x256xi1> to vector<8x256xi32>
    %18 = arith.sitofp %17 : vector<8x256xi32> to vector<8x256xf32>
    %cst_6 = arith.constant dense<0.000000e+00> : vector<8xf32>
    %19 = vector.multi_reduction <add>, %18, %cst_6 [1] : vector<8x256xf32> to vector<8xf32>
    %20 = vector.shape_cast %19 : vector<8xf32> to vector<8x1xf32>
    %21 = arith.extui %8 : vector<8x256xi1> to vector<8x256xi32>
    %22 = arith.sitofp %21 : vector<8x256xi32> to vector<8x256xf32>
    %cst_7 = arith.constant dense<0.000000e+00> : vector<8xf32>
    %23 = vector.multi_reduction <add>, %22, %cst_7 [1] : vector<8x256xf32> to vector<8xf32>
    %24 = vector.shape_cast %23 : vector<8xf32> to vector<8x1xf32>
    %25 = tpu.reciprocal %20 : vector<8x1xf32> -> vector<8x1xf32>
    %26 = arith.mulf %12, %25 : vector<8x1xf32>
    %27 = tpu.reciprocal %24 : vector<8x1xf32> -> vector<8x1xf32>
    %28 = arith.mulf %16, %27 : vector<8x1xf32>
    %29 = arith.subf %26, %28 : vector<8x1xf32>
    %cst_8 = arith.constant 2.000000e+00 : f32
    %30 = vector.broadcast %cst_8 : f32 to vector<8x1xf32>
    %31 = arith.subf %30, %29 : vector<8x1xf32>
    %c0_9 = arith.constant 0 : index
    %c0_10 = arith.constant 0 : index
    %32 = vector.load %arg2[%c0_9, %c0_10] : memref<8x1xf32, #tpu.memory_space<vmem>>, vector<8x1xf32>
    tpu.vector_store %arg2[%c0_9, %c0_10], %31 {strides = array<i32>} : memref<8x1xf32, #tpu.memory_space<vmem>>, vector<8x1xf32>,
    return
  }
  func.func @transform_0(%arg0: i32) -> (i32, i32) {
    %c0_i32 = arith.constant 0 : i32
    %c0_i32_0 = arith.constant 0 : i32
    return %arg0, %c0_i32 : i32, i32
  }
  func.func @transform_1(%arg0: i32) -> (i32, i32) {
    %c0_i32 = arith.constant 0 : i32
    %c0_i32_0 = arith.constant 0 : i32
    return %arg0, %c0_i32 : i32, i32
  }
}

</mosaic_0001>

<bundles_post_ra>
// kernel: tpu_custom_call.1
= control target key start
LH: loop header
LB: loop body
LE: loop exit
PB: predicated region body
PF: predicated region fallthrough
CT: control target
= control target key end

     0   :  { %6 = vsyncpa [#allocation3], 0  ;;  %s485_s0 = inlined_call_operand.hbm [shape: f32[16,256], index: 0, kind: input, shape index: {}]   ;;  %s486_s1 = inlined_call_operand.vmem [shape: f32[16,1], index: 1, kind: output, shape index: {}]  }
   0x1   :  { %8 = vsyncpa [#allocation3 + $0x1], 0  ;;  %s378_s6 = smov 0   ;;  %s380_s7 = smov 0  }
   0x2   :  { %s382_s8 = smov 0   ;;  %s384_s9 = smov 0  }
   0x3 LB: > { %s397_s10 = sadd.s32 4294967295, %s364_s9   ;;  %s400_s11 = sadd.s32 1, %s364_s9   ;;  %s364_s9 = sphi %s384_s9, %s494_s9   ;;  %s360_s8 = sphi %s382_s8, %s493_s8   ;;  %s356_s7 = sphi %s380_s7, %s492_s7   ;;  %s352_s6 = sphi %s378_s6, %s491_s6  }
   0x4   : > { %s18_s12 = ssub.s32 %s364_s9, %s400_s11  ;;  %s21_s13 = sadd.s32 1, %s360_s8 }
   0x5   : > { %p19_p0 = scmp.eq.s32.totalorder %s18_s12, 0  ;;  %p28_p1 = scmp.ne.s32.totalorder %s360_s8, %s356_s7 }
   0x6   : > { %p29_p2 = scmp.eq.s32.totalorder %s364_s9, 0  ;;  %p34_p3 = scmp.ne.s32.totalorder %s356_s7, %s352_s6 }
   0x7   : > { %s410_s14 = scalar_select %p19_p0, %s360_s8, %s21_s13  }
   0x8   : > { %p30_p4 = por %p29_p2, %p28_p1  ;;  %p35_p5 = scmp.eq.s32.totalorder %s397_s10, 0 }
   0x9   : > { %p262_p6 = scmp.lt.s32.totalorder %s364_s9, 2  ;;  %s84_s16 = sand.u32 1, %s360_s8  }
   0xa   : > { %p414_p7 = por %p35_p5, %p34_p3  ;;  %s243_s17 = sshll.u32 %s84_s16, 4 }
   0xb   : > { %s255_s18 = sshll.u32 %s364_s9, 8  ;;  %s88_s22 = scalar_lea.vmem [#allocation2], %s243_s17 }
   0xc   : > { %s423_s21 = scalar_lea.hbm %s485_s0, %s255_s18  ;;  %s96_s23 = sshll.u32 %s88_s22, 4  ;;  %s425_s23 = int_to_ptr.vmem [resolvable:$true] %s96_s23 }
   0xd   : > { %p427_p8 = pnand %p262_p6, %p30_p4  ;;  %s85_s25 = scalar_lea.sflag [#allocation3], %s84_s16 }
   0xe   : > { %s300_s26 = scalar_lea.hbm %s423_s21, 256  ;;  %s305_s29 = scalar_lea.hbm %s485_s0, 512 }
   0xf   : > { %p301_p11 = scmp.ne.s32.totalorder %s423_s21, %s300_s26  ;;  %p302_p12 = pneg %p427_p8 }
  0x10   : > { %p306_p1 = scmp.lt.u32.totalorder %s423_s21, %s485_s0  ;;  %p307_p2 = scmp.lt.u32.totalorder %s305_s29, %s300_s26 }
  0x11   : > { %p303_p13 = pnand %p302_p12, %p301_p11  ;;  %p309_p4 = scmp.lt.u32.totalorder %s300_s26, %s423_s21 }
  0x12   : > { %p308_p3 = por %p307_p2, %p306_p1 }
  0x13   : > { %p304_p0 = pneg %p303_p13 }
  0x14   : > { %p310_p5 = por %p309_p4, %p308_p3 }
  0x16   : > { %p311_p6 = pnand %p310_p5, %p304_p0 }
  0x18   : > { %314 = shalt.err (!%p311_p6)
}
  0x19   : > { %s315_s3 = scalar_lea.vmem %s425_s23, 256  ;;  %s366_s4 = smov [#allocation2]  }
  0x1a   : > { %p316_p11 = scmp.ne.s32.totalorder %s425_s23, %s315_s3  ;;  %s320_s5 = sshll.u32 %s366_s4, 4  ;;  %s321_s5 = int_to_ptr.vmem [resolvable:$false] %s320_s5 }
  0x1b   : > { %s322_s6 = scalar_lea.vmem %s321_s5, 512  ;;  %p323_p10 = scmp.lt.s32.totalorder %s425_s23, %s321_s5 }
  0x1c   : > { %p318_p13 = pnand %p316_p11, %p302_p12  ;;  %p324_p1 = scmp.lt.s32.totalorder %s322_s6, %s315_s3 }
  0x1e   : > { %p319_p9 = pneg %p318_p13  ;;  %p325_p2 = por %p324_p1, %p323_p10 }
  0x20   : > { %p326_p3 = pnand %p325_p2, %p319_p9 }
  0x22   : > { %329 = shalt.err (!%p326_p3)
}
  0x23   : > { %261 = dma.hbm_to_vmem [thread:$0]  (!%p427_p8), %s423_s21, 256, %s425_s23, %s85_s25  }
  0x24   : > { %p489_p0 = scmp.lt.s32.totalorder %s364_s9, 3  ;;  %p490_p4 = scmp.ge.s32.totalorder %s364_s9, 1 }
  0x26   : > { %p102_p12 = pnand %p490_p4, %p489_p0 }
  0x27   : > { %s107_s12 = sand.u32 (!%p102_p12), 1, %s356_s7  }
  0x28   : > { %105 = sbr.rel (%p102_p12) target bundleno = 360 (0x168), region = 24  ;;  %s247_s13 = sshll.u32 (!%p102_p12), %s107_s12, 4 }
  0x29   : > { %s108_s16 = scalar_lea.sflag (!%p102_p12), [#allocation3], %s107_s12  ;;  %s111_s17 = scalar_lea.vmem (!%p102_p12), [#allocation2], %s247_s13 }
  0x2f   : > { %347 = dma.done.wait (%p414_p7), %s108_s16, 256  }
  0x30   : > { %349 = vsyncadd (%p414_p7), %s108_s16, 4294967040  ;;  %v133_v0 = vld [vmem:[%s111_s17] sm:$0xff]  ;;  %v134_v1 = vld [vmem:[%s111_s17 + $0x8] sm:$0xff]  ;;  %v367_v5 = vmov 0.0   ;;  %p129_p7 = scmp.lt.s32.totalorder %s397_s10, 1  ;;  %vm173_vm4 = vcmask 7168  }
  0x31   : > { %v135_v2 = vadd.f32 %v134_v1, %v133_v0 }
  0x32   : > { %s496_s10 = smov (!%p129_p7, %s397_s10), 1 }
  0x33   : > { %136 = vadd.xlane.f32.xlu0 %v135_v2  ;;  %s248_s9 = sshll.u32 %s496_s10, 3 }
  0x34   : > { %s132_s19 = scalar_lea.vmem %s486_s1, %s248_s9 }
  0xc0   : > { %v137_v3 = vpop.xlane.xlu0 %136 }
  0xc1   : > { %v138_v4 = vmul.f32 0.00390625, %v137_v3 }
  0xc3   : > { %vm141_vm0 = vcmp.lt.f32.partialorder %v133_v0, %v138_v4  ;;  %vm142_vm1 = vcmp.lt.f32.partialorder %v134_v1, %v138_v4  ;;  %vm139_vm2 = vcmp.gt.f32.partialorder %v133_v0, %v138_v4  ;;  %vm140_vm3 = vcmp.gt.f32.partialorder %v134_v1, %v138_v4 }
  0xc4   : > { %v251_v6 = vsel %vm141_vm0, 1.0, %v367_v5  ;;  %v252_v7 = vsel %vm142_vm1, 1.0, %v367_v5  ;;  %v249_v8 = vsel %vm139_vm2, 1.0, %v367_v5  ;;  %v250_v9 = vsel %vm140_vm3, 1.0, %v367_v5 }
  0xc5   : > { %v164_v10 = vadd.f32 %v252_v7, %v251_v6  ;;  %v157_v11 = vadd.f32 %v250_v9, %v249_v8  ;;  %v148_v12 = vsel %vm141_vm0, %v133_v0, 0.0  ;;  %v149_v13 = vsel %vm142_vm1, %v134_v1, 0.0 }
  0xc6   : > { %v143_v14 = vsel %vm139_vm2, %v133_v0, 0.0  ;;  %v144_v15 = vsel %vm140_vm3, %v134_v1, 0.0  ;;  %v150_v16 = vadd.f32 %v149_v13, %v148_v12 }
  0xc7   : > { %165 = vadd.xlane.f32.xlu1 %v164_v10  ;;  %158 = vadd.xlane.f32.xlu0 %v157_v11  ;;  %v145_v17 = vadd.f32 %v144_v15, %v143_v14 }
  0xcb   : > { %151 = vadd.xlane.f32.xlu0 %v150_v16  ;;  %146 = vadd.xlane.f32.xlu1 %v145_v17 }
 0x154   : > { %v166_v18 = vpop.xlane.xlu1 %165  ;;  %v159_v19 = vpop.xlane.xlu0 %158 }
 0x155   : > { %296 = vrcp.f32 %v166_v18 }
 0x156   : > { %298 = vrcp.f32 %v159_v19 }
 0x158   : > { %v152_v21 = vpop.xlane.xlu0 %151  ;;  %v147_v24 = vpop.xlane.xlu1 %146 }
 0x15f   : > { %v297_v20 = vpop.eup %296 }
 0x160   : > { %v299_v22 = vpop.eup %298  ;;  %v170_v23 = vmul.f32 %v297_v20, %v152_v21 }
 0x161   : > { %v168_v25 = vmul.f32 %v299_v22, %v147_v24 }
 0x163   : > { %v171_v26 = vsub.f32 %v168_v25, %v170_v23 }
 0x165   : > { %v172_v27 = vsub.f32 2.0, %v171_v26 }
 0x167   : > { %174 = vst.msk [vmem:[%s132_s19] sm:$0xff] %vm173_vm4, %v172_v27 }
 0x168 PF: > { %p11_p8 = scmp.ge.s32.totalorder %s400_s11, 4   ;;  %s491_s6 = smov %s356_s7 }
 0x169   : > { %s492_s7 = smov %s360_s8  ;;  %s493_s8 = smov %s410_s14 }
 0x16a   : > { %s494_s9 = smov %s400_s11  ;;  %13 = sbr.rel (!%p11_p8) target bundleno = 3 (0x3), region = 64 }
 0x171   :  { %194 = vsyncpa [#allocation3], 1 }
 0x172   :  { %196 = vsyncpa [#allocation3 + $0x1], 1 }

</bundles_post_ra>
